<compile_context>
chip_gen: v6e
topology: v6e:2x2x1
jax: 0.10.0
libtpu: 0.0.40
codegen_flags: <defaults>
</compile_context>

<pallas_src>
import numpy as np

import jax
import jax.numpy as jnp
from jax.experimental import pallas as pl
from jax.experimental.pallas import tpu as pltpu

_MIB = 1024 * 1024


def _round_up(x, m):
    return ((x + m - 1) // m) * m


def _vmem_capacity_bytes():
    """Physical VMEM per TensorCore; conservative fallback if the query fails."""
    try:
        info = pltpu.get_tpu_info()
        cap = getattr(info, "vmem_capacity_bytes", None)
        if cap:
            return int(cap)
    except Exception:
        pass
    return 64 * _MIB  # v7x per-TC VMEM -- safe lower bound for all generations


# --------------------------------------------------------------------------
# Kernels
# --------------------------------------------------------------------------
def _fake_mlp_resident_kernel(x_ref, wg_ref, wu_ref, bu_ref, wd_ref, bsum_ref,
                              o_ref):
    """Weights fully resident in VMEM; grid is over row tiles only."""
    x = x_ref[...]                                                     # (tm, Ep)
    # gate_proj(x) -- f32 accumulation on the MXU.
    y0 = jnp.dot(x, wg_ref[...], preferred_element_type=jnp.float32)
    # up_proj(x) + bu
    yu = jnp.dot(x, wu_ref[...], preferred_element_type=jnp.float32) + bu_ref[...]
    # down_proj(up_proj(x)) -- cast intermediate back to compute dtype for MXU.
    y1 = jnp.dot(yu.astype(wd_ref.dtype), wd_ref[...],
                 preferred_element_type=jnp.float32)
    # bg + bd folded into bsum (added once).
    o_ref[...] = (y0 + y1 + bsum_ref[...]).astype(o_ref.dtype)


def _fake_mlp_tiled_kernel(x_ref, wu_ref, bu_ref, wg_ref, wd_ref, bsum_ref,
                           o_ref, yu_ref):
    """Column-tiled fallback: grid = (row tiles, output-column tiles).

    Wu^T stays resident (needed in full for up_proj); Wg^T / Wd^T stream in
    column tiles. The up-proj intermediate yu is computed once per row tile
    (at j == 0) and kept in VMEM scratch across the j ("arbitrary") axis.
    """
    j = pl.program_id(1)

    @pl.when(j == 0)
    def _():
        yu = (jnp.dot(x_ref[...], wu_ref[...],
                      preferred_element_type=jnp.float32) + bu_ref[...])
        yu_ref[...] = yu.astype(yu_ref.dtype)

    y0 = jnp.dot(x_ref[...], wg_ref[...], preferred_element_type=jnp.float32)
    y1 = jnp.dot(yu_ref[...], wd_ref[...], preferred_element_type=jnp.float32)
    o_ref[...] = (y0 + y1 + bsum_ref[...]).astype(o_ref.dtype)


# --------------------------------------------------------------------------
# Parameter packing (hoisted out of the per-call path)
# --------------------------------------------------------------------------
def pack_fake_mlp_params(wg, bg, wu, bu, wd, bd, *,
                         compute_dtype=jnp.bfloat16, align=256):
    """Transpose ([out,in] -> [in,out]), zero-pad E to a multiple of `align`
    (256 = full MXU columns on v6e/v7x, lane-dense), cast to the MXU operand
    dtype, and pre-sum bg + bd. Call ONCE per set of weights and reuse."""
    E = wg.shape[0]
    Ep = _round_up(E, align)
    cdt = np.dtype(compute_dtype)

    def pad_w(w):
        wt = jnp.asarray(w).T.astype(cdt)                       # [in, out]
        return jnp.pad(wt, ((0, Ep - E), (0, Ep - E)))

    def pad_b(b):
        return jnp.pad(jnp.asarray(b).astype(jnp.float32),
                       (0, Ep - E)).reshape(1, Ep)

    return dict(
        wg_t=pad_w(wg), wu_t=pad_w(wu), wd_t=pad_w(wd),
        bu=pad_b(bu), bsum=pad_b(bg) + pad_b(bd),
        E=E, Ep=Ep, compute_dtype=cdt,
    )


# --------------------------------------------------------------------------
# Wrapper
# --------------------------------------------------------------------------
def fake_mlp_packed(x, packed, *, tm=None, tn=256, force_tiled=False):
    """x: [B, S, E]; `packed` from pack_fake_mlp_params()."""
    B, S, E = x.shape
    assert E == packed["E"], "embedding dim mismatch vs packed params"
    Ep = packed["Ep"]
    cdt = packed["compute_dtype"]
    out_dtype = x.dtype
    cbytes = cdt.itemsize
    obytes = np.dtype(out_dtype).itemsize

    M = B * S
    Mp8 = _round_up(M, 8)

    # Row tile: big tiles when weights are small (amortize ~0.35us/grid step),
    # forced to a multiple of 8, and split so >=2 row tiles exist when M allows
    # (keeps both TensorCores busy under the "parallel" axis on 2-TC chips).
    if tm is None:
        tm = 1024 if Ep <= 512 else (512 if Ep <= 1024 else 256)
    tm = max(8, _round_up(int(tm), 8))
    if Mp8 >= 16:
        tm = min(tm, _round_up((Mp8 + 1) // 2, 8))
    tm = min(tm, Mp8)
    grid_m = pl.cdiv(M, tm)
    Mp = grid_m * tm

    x2 = jnp.pad(x.reshape(M, E).astype(cdt), ((0, Mp - M), (0, Ep - E)))

    cap = _vmem_capacity_bytes()
    budget = int(0.85 * cap)                 # per-generation cap, ~15% headroom

    # Resident-path VMEM footprint: single-buffered weights + biases,
    # double-buffered x / out row tiles, f32 intermediates.
    resident_bytes = (3 * Ep * Ep * cbytes
                      + 2 * Ep * 4
                      + 2 * tm * Ep * (cbytes + obytes)
                      + 4 * tm * Ep * 4)
    use_tiled = force_tiled or (resident_bytes + 16 * _MIB > budget)

    flops = 6 * Mp * Ep * Ep                 # three (Mp,Ep)x(Ep,Ep) matmuls
    bytes_accessed = (x2.size * cbytes + 3 * Ep * Ep * cbytes + 2 * Ep * 4
                      + Mp * Ep * obytes)
    cost = pl.CostEstimate(flops=int(flops), transcendentals=0,
                           bytes_accessed=int(bytes_accessed))

    # Grid-invariant operands: whole-array VMEM residence (single copy, no
    # per-step double-buffering).
    full_vmem = pl.BlockSpec(memory_space=pltpu.MemorySpace.VMEM)

    if not use_tiled:
        vmem_limit = int(min(budget, resident_bytes + 16 * _MIB))
        out2 = pl.pallas_call(
            _fake_mlp_resident_kernel,
            out_shape=jax.ShapeDtypeStruct((Mp, Ep), out_dtype),
            grid_spec=pltpu.PrefetchScalarGridSpec(
                num_scalar_prefetch=0,
                grid=(grid_m,),
                in_specs=[
                    pl.BlockSpec((tm, Ep), lambda i: (i, 0)),  # x row tile
                    full_vmem,                                 # Wg^T (resident)
                    full_vmem,                                 # Wu^T (resident)
                    full_vmem,                                 # bu
                    full_vmem,                                 # Wd^T (resident)
                    full_vmem,                                 # bg + bd
                ],
                out_specs=pl.BlockSpec((tm, Ep), lambda i: (i, 0)),
            ),
            compiler_params=pltpu.CompilerParams(
                dimension_semantics=("parallel",),
                vmem_limit_bytes=vmem_limit),
            cost_estimate=cost,
        )(x2, packed["wg_t"], packed["wu_t"], packed["bu"],
          packed["wd_t"], packed["bsum"])
    else:
        # Column-tiled fallback: stream Wg^T / Wd^T column tiles; keep Wu^T
        # resident and the up-proj intermediate in VMEM scratch across j.
        tn = max(128, min(_round_up(int(tn), 128), Ep))
        while Ep % tn:
            tn -= 128
        grid_n = Ep // tn
        tiled_bytes = (Ep * Ep * cbytes + Ep * 4        # resident Wu^T + bu
                       + 2 * tm * Ep * cbytes           # x row tile (dbl-buf)
                       + 4 * Ep * tn * cbytes           # Wg^T / Wd^T tiles
                       + 2 * tm * tn * obytes + 2 * tn * 4
                       + tm * Ep * cbytes               # yu scratch
                       + tm * Ep * 4 + 2 * tm * tn * 4) # f32 intermediates
        vmem_limit = int(min(budget, tiled_bytes + 16 * _MIB))
        out2 = pl.pallas_call(
            _fake_mlp_tiled_kernel,
            out_shape=jax.ShapeDtypeStruct((Mp, Ep), out_dtype),
            grid_spec=pltpu.PrefetchScalarGridSpec(
                num_scalar_prefetch=0,
                grid=(grid_m, grid_n),
                in_specs=[
                    pl.BlockSpec((tm, Ep), lambda i, j: (i, 0)),  # x row tile
                    full_vmem,                                    # Wu^T (resident)
                    full_vmem,                                    # bu
                    pl.BlockSpec((Ep, tn), lambda i, j: (0, j)),  # Wg^T col tile
                    pl.BlockSpec((Ep, tn), lambda i, j: (0, j)),  # Wd^T col tile
                    pl.BlockSpec((1, tn), lambda i, j: (0, j)),   # bg + bd tile
                ],
                out_specs=pl.BlockSpec((tm, tn), lambda i, j: (i, j)),
                scratch_shapes=[pltpu.VMEM((tm, Ep), cdt)],       # yu scratch
            ),
            compiler_params=pltpu.CompilerParams(
                dimension_semantics=("parallel", "arbitrary"),
                vmem_limit_bytes=vmem_limit),
            cost_estimate=cost,
        )(x2, packed["wu_t"], packed["bu"], packed["wg_t"],
          packed["wd_t"], packed["bsum"])

    return out2[:M, :E].reshape(B, S, E)


def fake_mlp(x, wg, bg, wu, bu, wd, bd, *, compute_dtype=jnp.bfloat16,
             tm=None, tn=256, force_tiled=False):
    """Convenience wrapper (packs weights per call; prefer pack+reuse)."""
    packed = pack_fake_mlp_params(wg, bg, wu, bu, wd, bd,
                                  compute_dtype=compute_dtype)
    return fake_mlp_packed(x, packed, tm=tm, tn=tn, force_tiled=force_tiled)


def fake_mlp_ref(x, wg, bg, wu, bu, wd, bd):
    y0 = x @ wg.T + bg
    y1 = x @ wu.T + bu
    y1 = y1 @ wd.T + bd
    return y0 + y1


# --------------------------------------------------------------------------
if __name__ == "__main__":
    key = jax.random.PRNGKey(0)
    B, S, E = 2, 8, 32   # batch=2, seq=8, emb_dim=32  -> M=16 rows

    ks = jax.random.split(key, 7)
    x = jax.random.normal(ks[0], (B, S, E), dtype=jnp.float32)

    # PyTorch Linear shapes: weight [out, in], bias [out].
    bound = 1.0 / (E ** 0.5)
    wg = jax.random.uniform(ks[1], (E, E), minval=-bound, maxval=bound, dtype=jnp.float32)
    bg = jax.random.uniform(ks[2], (E,),  minval=-bound, maxval=bound, dtype=jnp.float32)
    wu = jax.random.uniform(ks[3], (E, E), minval=-bound, maxval=bound, dtype=jnp.float32)
    bu = jax.random.uniform(ks[4], (E,),  minval=-bound, maxval=bound, dtype=jnp.float32)
    wd = jax.random.uniform(ks[5], (E, E), minval=-bound, maxval=bound, dtype=jnp.float32)
    bd = jax.random.uniform(ks[6], (E,),  minval=-bound, maxval=bound, dtype=jnp.float32)

    ref = fake_mlp_ref(x, wg, bg, wu, bu, wd, bd)

    # 1) Default path: weights packed once (hoisted), bf16 MXU operands with
    #    f32 accumulation. Looser tolerance vs the f32 reference is expected.
    packed_bf16 = pack_fake_mlp_params(wg, bg, wu, bu, wd, bd)
    out_bf16 = jax.block_until_ready(fake_mlp_packed(x, packed_bf16))
    assert out_bf16.shape == (B, S, E)
    assert jnp.allclose(out_bf16, ref, atol=2.5e-1, rtol=5e-2), "bf16 mismatch vs reference"

    # 2) f32 operands: matches the reference tightly.
    packed_f32 = pack_fake_mlp_params(wg, bg, wu, bu, wd, bd,
                                      compute_dtype=jnp.float32)
    out_f32 = jax.block_until_ready(fake_mlp_packed(x, packed_f32))
    assert jnp.allclose(out_f32, ref, atol=1e-4, rtol=1e-4), "f32 mismatch vs reference"

    # 3) Column-tiled fallback (auto-selected when resident weights would not
    #    fit VMEM, e.g. large E on v7x) -- forced here at small shape to verify
    #    correctness of the scratch/"arbitrary"-axis path.
    out_tiled = jax.block_until_ready(
        fake_mlp_packed(x, packed_f32, force_tiled=True, tn=128))
    assert jnp.allclose(out_tiled, ref, atol=1e-4, rtol=1e-4), "tiled-path mismatch vs reference"

    print("KERNEL_OK")
</pallas_src>

<mosaic_0001>
module attributes {stable_mosaic.version = 11 : i64} {
  func.func @_fake_mlp_resident_kernel(%arg0: i32, %arg1: memref<8x256xbf16, #tpu.memory_space<vmem>>, %arg2: memref<256x256xbf16, #tpu.memory_space<vmem>>, %arg3: memref<256x256xbf16, #tpu.memory_space<vmem>>, %arg4: memref<1x256xf32, #tpu.memory_space<vmem>>, %arg5: memref<256x256xbf16, #tpu.memory_space<vmem>>, %arg6: memref<1x256xf32, #tpu.memory_space<vmem>>, %arg7: memref<8x256xf32, #tpu.memory_space<vmem>>) attributes {dimension_semantics = [#tpu.dimension_semantics<parallel>], iteration_bounds = array<i64: 2>, scalar_prefetch = 0 : i64, scratch_operands = 0 : i64, tpu.core_type = #tpu.core_type<tc>, window_params = [{transform_indices = @transform_0, window_bounds = array<i64: 8, 256>}, {pipeline_mode = #tpu.pipeline_mode<synchronous>, transform_indices = @transform_1, window_bounds = array<i64: 256, 256>}, {pipeline_mode = #tpu.pipeline_mode<synchronous>, transform_indices = @transform_2, window_bounds = array<i64: 256, 256>}, {pipeline_mode = #tpu.pipeline_mode<synchronous>, transform_indices = @transform_3, window_bounds = array<i64: 1, 256>}, {pipeline_mode = #tpu.pipeline_mode<synchronous>, transform_indices = @transform_4, window_bounds = array<i64: 256, 256>}, {pipeline_mode = #tpu.pipeline_mode<synchronous>, transform_indices = @transform_5, window_bounds = array<i64: 1, 256>}, {transform_indices = @transform_6, window_bounds = array<i64: 8, 256>}]} {
    %c0 = arith.constant 0 : index
    %c0_0 = arith.constant 0 : index
    %0 = vector.load %arg1[%c0, %c0_0] : memref<8x256xbf16, #tpu.memory_space<vmem>>, vector<8x256xbf16>
    %c0_1 = arith.constant 0 : index
    %c0_2 = arith.constant 0 : index
    %1 = vector.load %arg2[%c0_1, %c0_2] : memref<256x256xbf16, #tpu.memory_space<vmem>>, vector<256x256xbf16>
    %cst = arith.constant dense<0.000000e+00> : vector<8x256xf32>
    %2 = tpu.matmul %0, %1, %cst {dimension_numbers = #tpu.dot_dimension_numbers<[1], [0], [0], [1], [0, 0, 1, 1], [], []>} : vector<8x256xbf16>, vector<256x256xbf16>, vector<8x256xf32> -> vector<8x256xf32>
    %c0_3 = arith.constant 0 : index
    %c0_4 = arith.constant 0 : index
    %3 = vector.load %arg3[%c0_3, %c0_4] : memref<256x256xbf16, #tpu.memory_space<vmem>>, vector<256x256xbf16>
    %cst_5 = arith.constant dense<0.000000e+00> : vector<8x256xf32>
    %4 = tpu.matmul %0, %3, %cst_5 {dimension_numbers = #tpu.dot_dimension_numbers<[1], [0], [0], [1], [0, 0, 1, 1], [], []>} : vector<8x256xbf16>, vector<256x256xbf16>, vector<8x256xf32> -> vector<8x256xf32>
    %c0_6 = arith.constant 0 : index
    %c0_7 = arith.constant 0 : index
    %5 = vector.load %arg4[%c0_6, %c0_7] : memref<1x256xf32, #tpu.memory_space<vmem>>, vector<1x256xf32>
    %6 = vector.broadcast %5 : vector<1x256xf32> to vector<8x256xf32>
    %7 = arith.addf %4, %6 : vector<8x256xf32>
    %8 = arith.truncf %7 : vector<8x256xf32> to vector<8x256xbf16>
    %c0_8 = arith.constant 0 : index
    %c0_9 = arith.constant 0 : index
    %9 = vector.load %arg5[%c0_8, %c0_9] : memref<256x256xbf16, #tpu.memory_space<vmem>>, vector<256x256xbf16>
    %cst_10 = arith.constant dense<0.000000e+00> : vector<8x256xf32>
    %10 = tpu.matmul %8, %9, %cst_10 {dimension_numbers = #tpu.dot_dimension_numbers<[1], [0], [0], [1], [0, 0, 1, 1], [], []>} : vector<8x256xbf16>, vector<256x256xbf16>, vector<8x256xf32> -> vector<8x256xf32>
    %11 = arith.addf %2, %10 : vector<8x256xf32>
    %c0_11 = arith.constant 0 : index
    %c0_12 = arith.constant 0 : index
    %12 = vector.load %arg6[%c0_11, %c0_12] : memref<1x256xf32, #tpu.memory_space<vmem>>, vector<1x256xf32>
    %13 = vector.broadcast %12 : vector<1x256xf32> to vector<8x256xf32>
    %14 = arith.addf %11, %13 : vector<8x256xf32>
    %c0_13 = arith.constant 0 : index
    %c0_14 = arith.constant 0 : index
    %15 = vector.load %arg7[%c0_13, %c0_14] : memref<8x256xf32, #tpu.memory_space<vmem>>, vector<8x256xf32>
    tpu.vector_store %arg7[%c0_13, %c0_14], %14 {strides = array<i32>} : memref<8x256xf32, #tpu.memory_space<vmem>>, vector<8x256xf32>,
    return
  }
  func.func @transform_0(%arg0: i32) -> (i32, i32) {
    %c0_i32 = arith.constant 0 : i32
    %c0_i32_0 = arith.constant 0 : i32
    return %arg0, %c0_i32 : i32, i32
  }
  func.func @transform_1(%arg0: i32) -> (i32, i32) {
    %c0_i32 = arith.constant 0 : i32
    %c0_i32_0 = arith.constant 0 : i32
    %c0_i32_1 = arith.constant 0 : i32
    return %c0_i32, %c0_i32_0 : i32, i32
  }
  func.func @transform_2(%arg0: i32) -> (i32, i32) {
    %c0_i32 = arith.constant 0 : i32
    %c0_i32_0 = arith.constant 0 : i32
    %c0_i32_1 = arith.constant 0 : i32
    return %c0_i32, %c0_i32_0 : i32, i32
  }
  func.func @transform_3(%arg0: i32) -> (i32, i32) {
    %c0_i32 = arith.constant 0 : i32
    %c0_i32_0 = arith.constant 0 : i32
    %c0_i32_1 = arith.constant 0 : i32
    return %c0_i32, %c0_i32_0 : i32, i32
  }
  func.func @transform_4(%arg0: i32) -> (i32, i32) {
    %c0_i32 = arith.constant 0 : i32
    %c0_i32_0 = arith.constant 0 : i32
    %c0_i32_1 = arith.constant 0 : i32
    return %c0_i32, %c0_i32_0 : i32, i32
  }
  func.func @transform_5(%arg0: i32) -> (i32, i32) {
    %c0_i32 = arith.constant 0 : i32
    %c0_i32_0 = arith.constant 0 : i32
    %c0_i32_1 = arith.constant 0 : i32
    return %c0_i32, %c0_i32_0 : i32, i32
  }
  func.func @transform_6(%arg0: i32) -> (i32, i32) {
    %c0_i32 = arith.constant 0 : i32
    %c0_i32_0 = arith.constant 0 : i32
    return %arg0, %c0_i32 : i32, i32
  }
}

</mosaic_0001>

<bundles_post_ra>
// kernel: tpu_custom_call.1
= control target key start
LH: loop header
LB: loop body
LE: loop exit
PB: predicated region body
PF: predicated region fallthrough
CT: control target
= control target key end

     0   :  { %s1937_s0 = inlined_call_operand.hbm [shape: bf16[16,256], index: 0, kind: input, shape index: {}]   ;;  %s1938_s1 = inlined_call_operand.hbm [shape: bf16[256,256], index: 1, kind: input, shape index: {}]   ;;  %s1939_s2 = inlined_call_operand.hbm [shape: bf16[256,256], index: 2, kind: input, shape index: {}]   ;;  %s1940_s3 = inlined_call_operand.vmem [shape: f32[1,256], index: 3, kind: input, shape index: {}]   ;;  %s1941_s4 = inlined_call_operand.hbm [shape: bf16[256,256], index: 4, kind: input, shape index: {}]   ;;  %s1942_s5 = inlined_call_operand.vmem [shape: f32[1,256], index: 5, kind: input, shape index: {}]   ;;  %s1943_s6 = inlined_call_operand.hbm [shape: f32[16,256], index: 6, kind: output, shape index: {}]  }
   0x1   :  { %1948 = sst [smem:[#allocation15_spill]] %s1938_s1 }
   0x2   :  { %11 = vsyncpa [#allocation3], 0 }
   0x3   :  { %13 = vsyncpa [#allocation3 + $0x1], 0 }
   0x4   :  { %14 = vsyncpa [#allocation6], 0 }
   0x5   :  { %15 = vsyncpa [#allocation9], 0 }
   0x6   :  { %16 = vsyncpa [#allocation4], 0 }
   0x7   :  { %18 = vsyncpa [#allocation4 + $0x1], 0  ;;  %s1730_s21 = smov 0   ;;  %s1732_s22 = smov 0  }
   0x8   :  { %s1734_s23 = smov 0   ;;  %s1736_s24 = smov 0  }
   0x9 LB: > { %s1751_s25 = sadd.s32 4294967295, %s1686_s24   ;;  %s1163_s26 = sadd.s32 4294967294, %s1686_s24   ;;  %s1686_s24 = sphi %s1736_s24, %s1969_s24   ;;  %s1682_s23 = sphi %s1734_s23, %s1968_s23   ;;  %s1678_s22 = sphi %s1732_s22, %s1967_s22   ;;  %s1674_s21 = sphi %s1730_s21, %s1966_s21  }
   0xa   : > { %p44_p0 = scmp.ne.s32.totalorder %s1678_s22, %s1674_s21  ;;  %p1944_p1 = scmp.eq.s32.totalorder %s1751_s25, 0 }
   0xb   : > { %p179_p3 = scmp.eq.s32.totalorder %s1163_s26, 1  ;;  %p1164_p5 = scmp.ge.s32.totalorder %s1686_s24, 1 }
   0xc   : > { %p1760_p4 = por %p1944_p1, %p44_p0  ;;  %p186_p7 = scmp.lt.s32.totalorder %s1686_s24, 3 }
   0xd   : > { %p1765_p6 = por %p179_p3, %p44_p0  ;;  %s1688_s30 = smov [#allocation5]  }
   0xe   : > { %s1949_s27 = scalar_select %p1760_p4, 1, 0 }
   0xf   : > { %s1950_s28 = scalar_select %p1765_p6, 1, 0 }
  0x10   : > { %p1770_p8 = pnand %p1164_p5, %p186_p7  ;;  %s198_s7 = sshll.u32 %s1688_s30, 4  ;;  %s199_s7 = int_to_ptr.vmem [resolvable:$true] %s198_s7 }
  0x11   : > { %s1689_s9 = smov [#allocation7]   ;;  %s1690_s11 = smov [#allocation8]  }
  0x12   : > { %s1951_s29 = scalar_select %p1770_p8, 1, 0 }
  0x13   : > { %p1299_p9 = pneg %p1770_p8  ;;  %s211_s10 = sshll.u32 %s1689_s9, 4  ;;  %s212_s10 = int_to_ptr.vmem [resolvable:$true] %s211_s10 }
  0x14   : > { %s227_s12 = sshll.u32 %s1690_s11, 4  ;;  %s1519_s13 = scalar_lea.vmem %s199_s7, 4096  ;;  %s228_s12 = int_to_ptr.vmem [resolvable:$true] %s227_s12 }
  0x15   : > { %p1779_p11 = pnand %p1299_p9, %p1944_p1  ;;  %p1520_p13 = scmp.ne.s32.totalorder %s199_s7, %s1519_s13 }
  0x16   : > { %p1527_p5 = scmp.lt.s32.totalorder %s199_s7, %s199_s7  ;;  %p1528_p7 = scmp.lt.s32.totalorder %s1519_s13, %s1519_s13 }
  0x17   : > { %p1510_p12 = pneg %p1779_p11 }
  0x18   : > { %p1529_p9 = por %p1528_p7, %p1527_p5 }
  0x19   : > { %p1522_p0 = pnand %p1520_p13, %p1510_p12 }
  0x1b   : > { %p1523_p3 = pneg %p1522_p0 }
  0x1d   : > { %p1530_p10 = pnand %p1529_p9, %p1523_p3 }
  0x1f   : > { %1533 = shalt.err (!%p1530_p10)
}
  0x20   : > { %s1691_s14 = smov 128   ;;  %s1692_s15 = smov 8  }
  0x21   : > { %s1953_s1 = sld [smem:[#allocation15_spill]]  ;;  %s1545_s18 = scalar_lea.vmem %s212_s10, 4096 }
  0x22   : > { %p1546_p1 = scmp.ne.s32.totalorder %s212_s10, %s1545_s18  ;;  %p1553_p2 = scmp.lt.s32.totalorder %s212_s10, %s212_s10 }
  0x23   : > { %p1554_p6 = scmp.lt.s32.totalorder %s1545_s18, %s1545_s18 }
  0x24   : > { %p1548_p13 = pnand %p1546_p1, %p1510_p12 }
  0x25   : > { %p1555_p5 = por %p1554_p6, %p1553_p2 }
  0x26   : > { %p1549_p0 = pneg %p1548_p13 }
  0x27   : > { %1302 = dma.hbm_to_vmem [thread:$0]  (!%p1779_p11), %s1953_s1, 4096, %s199_s7, [#allocation6], %s1691_s14, %s1691_s14, %s1692_s15  }
  0x28   : > { %p1556_p3 = pnand %p1555_p5, %p1549_p0 }
  0x2a   : > { %1559 = shalt.err (!%p1556_p3)
}
  0x2b   : > { %1305 = dma.hbm_to_vmem [thread:$0]  (!%p1779_p11), %s1939_s2, 4096, %s212_s10, [#allocation6], %s1691_s14, %s1691_s14, %s1692_s15  }
  0x2c   : > { %s1571_s26 = scalar_lea.vmem %s228_s12, 4096  ;;  %p1579_p9 = scmp.lt.s32.totalorder %s228_s12, %s228_s12 }
  0x2d   : > { %p1572_p10 = scmp.ne.s32.totalorder %s228_s12, %s1571_s26  ;;  %p1580_p13 = scmp.lt.s32.totalorder %s1571_s26, %s1571_s26 }
  0x2f   : > { %p1574_p7 = pnand %p1572_p10, %p1510_p12  ;;  %p1581_p4 = por %p1580_p13, %p1579_p9 }
  0x31   : > { %p1575_p1 = pneg %p1574_p7 }
  0x33   : > { %p1582_p2 = pnand %p1581_p4, %p1575_p1 }
  0x35   : > { %1585 = shalt.err (!%p1582_p2)
}
  0x36   : > { %1308 = dma.hbm_to_vmem [thread:$0]  (!%p1779_p11), %s1941_s4, 4096, %s228_s12, [#allocation9], %s1691_s14, %s1691_s14, %s1692_s15  }
  0x37   : > { %s1810_s9 = sadd.s32 1, %s1686_s24   ;;  %s31_s8 = sadd.s32 1, %s1682_s23 }
  0x38   : > { %s28_s10 = ssub.s32 %s1686_s24, %s1810_s9  ;;  %p38_p6 = scmp.ne.s32.totalorder %s1682_s23, %s1678_s22 }
  0x39   : > { %p29_p4 = scmp.eq.s32.totalorder %s28_s10, 0  ;;  %p39_p12 = scmp.eq.s32.totalorder %s1686_s24, 0 }
  0x3a   : > { %p1320_p0 = scmp.lt.s32.totalorder %s1686_s24, 2  ;;  %p1954_p3 = scmp.eq.s32.totalorder %s1751_s25, 1 }
  0x3b   : > { %s1820_s11 = scalar_select %p29_p4, %s1682_s23, %s31_s8  }
  0x3c   : > { %p40_p5 = por %p39_p12, %p38_p6  ;;  %p1824_p10 = por %p1954_p3, %p38_p6 }
  0x3d   : > { %s244_s16 = sand.u32 1, %s1682_s23   ;;  %s1281_s17 = sshll.u32 %s1686_s24, 7 }
  0x3e   : > { %s1955_s13 = scalar_select %p1824_p10, 1, 0 }
  0x3f   : > { %s1169_s12 = sshll.u32 %s244_s16, 3  ;;  %s1833_s18 = scalar_lea.hbm %s1937_s0, %s1281_s17 }
  0x40   : > { %s248_s19 = scalar_lea.vmem [#allocation2], %s1169_s12  ;;  %p1835_p11 = pnand %p1320_p0, %p40_p5 }
  0x41   : > { %s256_s20 = sshll.u32 %s248_s19, 4  ;;  %s245_s30 = scalar_lea.sflag [#allocation3], %s244_s16  ;;  %s257_s20 = int_to_ptr.vmem [resolvable:$true] %s256_s20 }
  0x42   : > { %s1586_s7 = scalar_lea.hbm %s1833_s18, 128  ;;  %p1588_p1 = pneg %p1835_p11 }
  0x43   : > { %p1587_p7 = scmp.ne.s32.totalorder %s1833_s18, %s1586_s7  ;;  %s1591_s17 = scalar_lea.hbm %s1937_s0, 256 }
  0x44   : > { %p1592_p2 = scmp.lt.s32.totalorder %s1833_s18, %s1937_s0  ;;  %p1593_p4 = scmp.lt.s32.totalorder %s1591_s17, %s1586_s7 }
  0x45   : > { %p1589_p9 = pnand %p1588_p1, %p1587_p7 }
  0x46   : > { %p1594_p6 = por %p1593_p4, %p1592_p2 }
  0x47   : > { %p1590_p13 = pneg %p1589_p9 }
  0x49   : > { %p1595_p12 = pnand %p1594_p6, %p1590_p13 }
  0x4b   : > { %1598 = shalt.err (!%p1595_p12)
}
  0x4c   : > { %s1599_s15 = scalar_lea.vmem %s257_s20, 128  ;;  %s1693_s16 = smov [#allocation2]  }
  0x4d   : > { %p1600_p0 = scmp.ne.s32.totalorder %s257_s20, %s1599_s15  ;;  %s1604_s19 = sshll.u32 %s1693_s16, 4  ;;  %s1605_s19 = int_to_ptr.vmem [resolvable:$false] %s1604_s19 }
  0x4e   : > { %s1606_s1 = scalar_lea.vmem %s1605_s19, 256  ;;  %p1607_p7 = scmp.lt.s32.totalorder %s257_s20, %s1605_s19 }
  0x4f   : > { %p1602_p5 = pnand %p1600_p0, %p1588_p1  ;;  %p1608_p9 = scmp.lt.s32.totalorder %s1606_s1, %s1599_s15 }
  0x51   : > { %p1603_p3 = pneg %p1602_p5  ;;  %p1609_p10 = por %p1608_p9, %p1607_p7 }
  0x53   : > { %p1610_p8 = pnand %p1609_p10, %p1603_p3 }
  0x55   : > { %1613 = shalt.err (!%p1610_p8)
}
  0x56   : > { %1312 = dma.hbm_to_vmem [thread:$0]  (!%p1835_p11), %s1833_s18, 128, %s257_s20, %s245_s30  }
  0x57   : > { %p1957_p13 = scmp.ne.s32.totalorder %s1951_s29, 0 }
  0x58   : > { %s1856_s7 = sand.u32 (!%p1957_p13), 1, %s1678_s22   ;;  %p1958_p1 = scmp.ne.s32.totalorder (!%p1957_p13), %s1949_s27, 0 }
  0x59   : > { %265 = sbr.rel (%p1957_p13) target bundleno = 578 (0x242), region = 44  ;;  %s1173_s10 = sshll.u32 (!%p1957_p13), %s1856_s7, 3 }
  0x5a   : > { %s268_s8 = scalar_lea.sflag (!%p1957_p13), [#allocation3], %s1856_s7  ;;  %s1860_s17 = scalar_lea.vmem (!%p1957_p13), [#allocation2], %s1173_s10 }
  0x5e   : > { %1657 = dma.done.wait (%p1958_p1), %s268_s8, 128  }
  0x5f   : > { %1659 = vsyncadd (%p1958_p1), %s268_s8, 4294967168  ;;  %p1959_p8 = scmp.eq.s32.totalorder %s1751_s25, 0 }
  0x61   : > { %1661 = dma.done.wait (%p1959_p8), [#allocation6], 8192   ;;  %p1960_p10 = pmov %p1959_p8 }
  0x62   : > { %p1961_p11 = pmov %p1959_p8 }
  0x63   : > { %1663 = vsyncadd (%p1960_p10), [#allocation6], 4294959104 }
  0x64   : > { %1665 = dma.done.wait (%p1961_p11), [#allocation9], 4096   ;;  %p1962_p2 = pmov %p1959_p8 }
  0x65   : > { %v1362_v0 = vld [vmem:[#allocation7 + $0x74] ss:$8 sps:$4 sm:$0xff]   ;;  %v1364_v1 = vld [vmem:[#allocation7 + $0x70] ss:$8 sps:$4 sm:$0xff]   ;;  %v1365_v2 = vld [vmem:[#allocation7 + $0x64] ss:$8 sps:$4 sm:$0xff]  }
  0x66   : > { %1667 = vsyncadd (%p1962_p2), [#allocation9], 4294963200  ;;  %556 = vmatprep.subr.bf16.mxu0 %v1362_v0  ;;  %v1367_v3 = vld [vmem:[#allocation7 + $0x60] ss:$8 sps:$4 sm:$0xff]   ;;  %v1368_v4 = vld [vmem:[#allocation7 + $0x54] ss:$8 sps:$4 sm:$0xff]  }
  0x67   : > { %557 = vmatpush1.bf16.msra.mxu0 %v1364_v1  ;;  %v1370_v5 = vld [vmem:[#allocation7 + $0x50] ss:$8 sps:$4 sm:$0xff]   ;;  %v1371_v6 = vld [vmem:[#allocation7 + $0x44] ss:$8 sps:$4 sm:$0xff]   ;;  %v1373_v7 = vld [vmem:[#allocation7 + $0x40] ss:$8 sps:$4 sm:$0xff]  }
  0x68   : > { %558 = vmatprep.subr.bf16.mxu0 %v1365_v2  ;;  %v1374_v8 = vld [vmem:[#allocation7 + $0x34] ss:$8 sps:$4 sm:$0xff]   ;;  %v1376_v9 = vld [vmem:[#allocation7 + $0x30] ss:$8 sps:$4 sm:$0xff]   ;;  %v1377_v10 = vld [vmem:[#allocation7 + $0x24] ss:$8 sps:$4 sm:$0xff]  }
  0x69   : > { %v1379_v11 = vld [vmem:[#allocation7 + $0x20] ss:$8 sps:$4 sm:$0xff]   ;;  %v1380_v12 = vld [vmem:[#allocation7 + $0x14] ss:$8 sps:$4 sm:$0xff]   ;;  %v1382_v15 = vld [vmem:[#allocation7 + $0x10] ss:$8 sps:$4 sm:$0xff]  }
  0x6a   : > { %v1875_v13 = vld [vmem:[%s1860_s17] sm:$0xff]  ;;  %v1383_v16 = vld [vmem:[#allocation7 + $0x4] ss:$8 sps:$4 sm:$0xff]   ;;  %v1385_v19 = vld [vmem:[#allocation7] ss:$8 sps:$4 sm:$0xff]   ;;  %s1177_s29 = sshll.u32 %s1856_s7, 4 }
  0x6b   : > { %559 = vmatpush1.bf16.msra.mxu0 %v1367_v3  ;;  %v1879_v14 = vcombine.high %v1875_v13, %v1875_v13  ;;  %v1418_v17 = vld [vmem:[#allocation8 + $0x74] ss:$8 sps:$4 sm:$0xff]   ;;  %v1420_v18 = vld [vmem:[#allocation8 + $0x70] ss:$8 sps:$4 sm:$0xff]   ;;  %v1424_v21 = vld [vmem:[#allocation8 + $0x64] ss:$8 sps:$4 sm:$0xff]   ;;  %v1884_v56 = vcombine.low %v1875_v13, %v1875_v13 }
  0x6c   : > { %560 = vmatprep.subr.bf16.mxu0 %v1368_v4  ;;  %v1386_v20 = vld [vmem:[#allocation7 + $0xf4] ss:$8 sps:$4 sm:$0xff]   ;;  %791 = vmatprep.subr.bf16.mxu1 %v1418_v17  ;;  %v1426_v22 = vld [vmem:[#allocation8 + $0x60] ss:$8 sps:$4 sm:$0xff]   ;;  %v1388_v23 = vld [vmem:[#allocation7 + $0xf0] ss:$8 sps:$4 sm:$0xff]  }
  0x6d   : > { %588 = vmatprep.mubr.bf16.mxu0 %v1879_v14  ;;  %792 = vmatpush1.bf16.msra.mxu1 %v1420_v18  ;;  %v1430_v24 = vld [vmem:[#allocation8 + $0x54] ss:$8 sps:$4 sm:$0xff]   ;;  %v1389_v25 = vld [vmem:[#allocation7 + $0xe4] ss:$8 sps:$4 sm:$0xff]   ;;  %v1432_v26 = vld [vmem:[#allocation8 + $0x50] ss:$8 sps:$4 sm:$0xff]  }
  0x6e   : > { %793 = vmatprep.subr.bf16.mxu1 %v1424_v21  ;;  %v1436_v27 = vld [vmem:[#allocation8 + $0x44] ss:$8 sps:$4 sm:$0xff]   ;;  %v1391_v28 = vld [vmem:[#allocation7 + $0xe0] ss:$8 sps:$4 sm:$0xff]   ;;  %v1392_v29 = vld [vmem:[#allocation7 + $0xd4] ss:$8 sps:$4 sm:$0xff]  }
  0x6f   : > { %561 = vmatpush1.bf16.msra.mxu0 %v1370_v5  ;;  %v1438_v30 = vld [vmem:[#allocation8 + $0x40] ss:$8 sps:$4 sm:$0xff]   ;;  %v1442_v31 = vld [vmem:[#allocation8 + $0x34] ss:$8 sps:$4 sm:$0xff]   ;;  %v1394_v32 = vld [vmem:[#allocation7 + $0xd0] ss:$8 sps:$4 sm:$0xff]  }
  0x70   : > { %562 = vmatprep.subr.bf16.mxu0 %v1371_v6  ;;  %v1395_v33 = vld [vmem:[#allocation7 + $0xc4] ss:$8 sps:$4 sm:$0xff]   ;;  %v1444_v34 = vld [vmem:[#allocation8 + $0x30] ss:$8 sps:$4 sm:$0xff]   ;;  %v1397_v36 = vld [vmem:[#allocation7 + $0xc0] ss:$8 sps:$4 sm:$0xff]  }
  0x71   : > { %794 = vmatpush1.bf16.msra.mxu1 %v1426_v22  ;;  %v1448_v35 = vld [vmem:[#allocation8 + $0x24] ss:$8 sps:$4 sm:$0xff]   ;;  %v1398_v37 = vld [vmem:[#allocation7 + $0xb4] ss:$8 sps:$4 sm:$0xff]   ;;  %v1450_v38 = vld [vmem:[#allocation8 + $0x20] ss:$8 sps:$4 sm:$0xff]  }
  0x72   : > { %795 = vmatprep.subr.bf16.mxu1 %v1430_v24  ;;  %v1454_v39 = vld [vmem:[#allocation8 + $0x14] ss:$8 sps:$4 sm:$0xff]   ;;  %v1400_v40 = vld [vmem:[#allocation7 + $0xb0] ss:$8 sps:$4 sm:$0xff]   ;;  %v1401_v41 = vld [vmem:[#allocation7 + $0xa4] ss:$8 sps:$4 sm:$0xff]  }
  0x73   : > { %563 = vmatpush1.bf16.msra.mxu0 %v1373_v7  ;;  %v1456_v42 = vld [vmem:[#allocation8 + $0x10] ss:$8 sps:$4 sm:$0xff]   ;;  %v1460_v43 = vld [vmem:[#allocation8 + $0x4] ss:$8 sps:$4 sm:$0xff]   ;;  %v1403_v44 = vld [vmem:[#allocation7 + $0xa0] ss:$8 sps:$4 sm:$0xff]  }
  0x74   : > { %564 = vmatprep.subr.bf16.mxu0 %v1374_v8  ;;  %v1404_v45 = vld [vmem:[#allocation7 + $0x94] ss:$8 sps:$4 sm:$0xff]   ;;  %v1462_v46 = vld [vmem:[#allocation8] ss:$8 sps:$4 sm:$0xff]   ;;  %v1406_v48 = vld [vmem:[#allocation7 + $0x90] ss:$8 sps:$4 sm:$0xff]  }
  0x75   : > { %796 = vmatpush1.bf16.msra.mxu1 %v1432_v26  ;;  %v1466_v47 = vld [vmem:[#allocation8 + $0xf4] ss:$8 sps:$4 sm:$0xff]   ;;  %v1407_v49 = vld [vmem:[#allocation7 + $0x84] ss:$8 sps:$4 sm:$0xff]   ;;  %v1468_v50 = vld [vmem:[#allocation8 + $0xf0] ss:$8 sps:$4 sm:$0xff]  }
  0x76   : > { %797 = vmatprep.subr.bf16.mxu1 %v1436_v27  ;;  %v1472_v51 = vld [vmem:[#allocation8 + $0xe4] ss:$8 sps:$4 sm:$0xff]   ;;  %v1409_v52 = vld [vmem:[#allocation7 + $0x80] ss:$8 sps:$4 sm:$0xff]   ;;  %v1414_v53 = vld [vmem:[#allocation5 + $0x74] ss:$8 sps:$4 sm:$0xff]  }
  0x77   : > { %565 = vmatpush1.bf16.msra.mxu0 %v1376_v9  ;;  %v1474_v54 = vld [vmem:[#allocation8 + $0xe0] ss:$8 sps:$4 sm:$0xff]   ;;  %v1478_v55 = vld [vmem:[#allocation8 + $0xd4] ss:$8 sps:$4 sm:$0xff]   ;;  %v1412_v57 = vld [vmem:[#allocation5 + $0x70] ss:$8 sps:$4 sm:$0xff]  }
  0x78   : > { %566 = vmatprep.subr.bf16.mxu0 %v1377_v10  ;;  %v1417_v58 = vld [vmem:[#allocation5 + $0x64] ss:$8 sps:$4 sm:$0xff]   ;;  %v1480_v59 = vld [vmem:[#allocation8 + $0xd0] ss:$8 sps:$4 sm:$0xff]   ;;  %v1415_v61 = vld [vmem:[#allocation5 + $0x60] ss:$8 sps:$4 sm:$0xff]  }
  0x79   : > { %798 = vmatpush1.bf16.msra.mxu1 %v1438_v30  ;;  %v1484_v60 = vld [vmem:[#allocation8 + $0xc4] ss:$8 sps:$4 sm:$0xff]   ;;  %v1423_v62 = vld [vmem:[#allocation5 + $0x54] ss:$8 sps:$4 sm:$0xff]   ;;  %v1486_v63 = vld [vmem:[#allocation8 + $0xc0] ss:$8 sps:$4 sm:$0xff]  }
  0x7a   : > { %799 = vmatprep.subr.bf16.mxu1 %v1442_v31  ;;  %v1490_v0 = vld [vmem:[#allocation8 + $0xb4] ss:$8 sps:$4 sm:$0xff]   ;;  %v1421_v1 = vld [vmem:[#allocation5 + $0x50] ss:$8 sps:$4 sm:$0xff]   ;;  %v1429_v2 = vld [vmem:[#allocation5 + $0x44] ss:$8 sps:$4 sm:$0xff]  }
  0x7b   : > { %567 = vmatpush1.bf16.msra.mxu0 %v1379_v11  ;;  %v1492_v3 = vld [vmem:[#allocation8 + $0xb0] ss:$8 sps:$4 sm:$0xff]   ;;  %v1496_v4 = vld [vmem:[#allocation8 + $0xa4] ss:$8 sps:$4 sm:$0xff]   ;;  %v1427_v5 = vld [vmem:[#allocation5 + $0x40] ss:$8 sps:$4 sm:$0xff]  }
  0x7c   : > { %568 = vmatprep.subr.bf16.mxu0 %v1380_v12  ;;  %v1435_v6 = vld [vmem:[#allocation5 + $0x34] ss:$8 sps:$4 sm:$0xff]   ;;  %v1498_v7 = vld [vmem:[#allocation8 + $0xa0] ss:$8 sps:$4 sm:$0xff]   ;;  %v1433_v8 = vld [vmem:[#allocation5 + $0x30] ss:$8 sps:$4 sm:$0xff]  }
  0x7d   : > { %800 = vmatpush1.bf16.msra.mxu1 %v1444_v34  ;;  %v1441_v9 = vld [vmem:[#allocation5 + $0x24] ss:$8 sps:$4 sm:$0xff]   ;;  %v1439_v10 = vld [vmem:[#allocation5 + $0x20] ss:$8 sps:$4 sm:$0xff]   ;;  %v1447_v11 = vld [vmem:[#allocation5 + $0x14] ss:$8 sps:$4 sm:$0xff]  }
  0x7e   : > { %801 = vmatprep.subr.bf16.mxu1 %v1448_v35  ;;  %v1445_v12 = vld [vmem:[#allocation5 + $0x10] ss:$8 sps:$4 sm:$0xff]   ;;  %v1453_v13 = vld [vmem:[#allocation5 + $0x4] ss:$8 sps:$4 sm:$0xff]   ;;  %v1463_v18 = vld [vmem:[#allocation5 + $0xe0] ss:$8 sps:$4 sm:$0xff]   ;;  %v379_v35 = vlaneseq }
  0x7f   : > { %569 = vmatpush1.bf16.msra.mxu0 %v1382_v15  ;;  %v1459_v15 = vld [vmem:[#allocation5 + $0xf4] ss:$8 sps:$4 sm:$0xff]   ;;  %v1465_v17 = vld [vmem:[#allocation5 + $0xe4] ss:$8 sps:$4 sm:$0xff]   ;;  %v1475_v22 = vld [vmem:[#allocation5 + $0xc0] ss:$8 sps:$4 sm:$0xff]  }
  0x80   : > { %570 = vmatprep.subr.bf16.mxu0 %v1383_v16  ;;  %v1457_v16 = vld [vmem:[#allocation5 + $0xf0] ss:$8 sps:$4 sm:$0xff]   ;;  %v1477_v21 = vld [vmem:[#allocation5 + $0xc4] ss:$8 sps:$4 sm:$0xff]   ;;  %v1487_v26 = vld [vmem:[#allocation5 + $0xa0] ss:$8 sps:$4 sm:$0xff]  }
  0x81   : > { %802 = vmatpush1.bf16.msra.mxu1 %v1450_v38  ;;  %v1481_v24 = vld [vmem:[#allocation5 + $0xb0] ss:$8 sps:$4 sm:$0xff]   ;;  %v1495_v27 = vld [vmem:[#allocation5 + $0x94] ss:$8 sps:$4 sm:$0xff]   ;;  %v1499_v30 = vld [vmem:[#allocation5 + $0x80] ss:$8 sps:$4 sm:$0xff]  }
  0x82   : > { %803 = vmatprep.subr.bf16.mxu1 %v1454_v39  ;;  %v1502_v31 = vld [vmem:[#allocation8 + $0x94] ss:$8 sps:$4 sm:$0xff]   ;;  %v1507_v34 = vld [vmem:[#allocation8 + $0x80] ss:$8 sps:$4 sm:$0xff]   ;;  %v377_v38 = vld [vmem:[%s1940_s3] sm:$0x3] }
  0x83   : > { %571 = vmatpush1.bf16.msra.mxu0 %v1385_v19  ;;  %v1471_v19 = vld [vmem:[#allocation5 + $0xd4] ss:$8 sps:$4 sm:$0xff]   ;;  %s1282_s26 = sshll.u32 %s1751_s25, 8  ;;  %s311_s30 = scalar_lea.vmem [#allocation10], %s1177_s29 }
  0x84   : > { %572 = vmatprep.subr.bf16.mxu0 %v1386_v20  ;;  %v1469_v20 = vld [vmem:[#allocation5 + $0xd0] ss:$8 sps:$4 sm:$0xff]   ;;  %s1064_s14 = sshll.u32 %s311_s30, 4  ;;  %s1900_s16 = scalar_lea.hbm %s1943_s6, %s1282_s26  ;;  %s1065_s14 = int_to_ptr.vmem [resolvable:$true] %s1064_s14 }
  0x85   : > { %804 = vmatpush1.bf16.msra.mxu1 %v1456_v42  ;;  %s1050_s19 = scalar_lea.sflag [#allocation4], %s1856_s7  ;;  %s1614_s10 = scalar_lea.vmem %s1065_s14, 256 }
  0x86   : > { %805 = vmatprep.subr.bf16.mxu1 %v1460_v43  ;;  %p1615_p4 = scmp.ne.s32.totalorder %s1065_s14, %s1614_s10  ;;  %p1963_p6 = scmp.ne.s32.totalorder %s1955_s13, 0 }
  0x87   : > { %573 = vmatpush2.bf16.msra.mxu0 %v1388_v23  ;;  %v1483_v23 = vld [vmem:[#allocation5 + $0xb4] ss:$8 sps:$4 sm:$0xff]   ;;  %s1694_s25 = smov [#allocation10]  }
  0x88   : > { %574 = vmatprep.subr.bf16.mxu0 %v1389_v25  ;;  %v1489_v25 = vld [vmem:[#allocation5 + $0xa4] ss:$8 sps:$4 sm:$0xff]   ;;  %p1616_p12 = pnand %p1615_p4, %p1963_p6  ;;  %s1618_s8 = sshll.u32 %s1694_s25, 4  ;;  %s1619_s8 = int_to_ptr.vmem [resolvable:$false] %s1618_s8 }
  0x89   : > { %806 = vmatpush1.bf16.msra.mxu1 %v1462_v46  ;;  %s1620_s17 = scalar_lea.vmem %s1619_s8, 512  ;;  %p1621_p5 = scmp.lt.s32.totalorder %s1065_s14, %s1619_s8 }
  0x8a   : > { %807 = vmatprep.subr.bf16.mxu1 %v1466_v47  ;;  %p1617_p0 = pneg %p1616_p12  ;;  %p1622_p3 = scmp.lt.s32.totalorder %s1620_s17, %s1614_s10 }
  0x8b   : > { %575 = vmatpush2.bf16.msra.mxu0 %v1391_v28  ;;  %v1493_v28 = vld [vmem:[#allocation5 + $0x90] ss:$8 sps:$4 sm:$0xff]  }
  0x8c   : > { %576 = vmatprep.subr.bf16.mxu0 %v1392_v29  ;;  %v1501_v29 = vld [vmem:[#allocation5 + $0x84] ss:$8 sps:$4 sm:$0xff]   ;;  %p1623_p7 = por %p1622_p3, %p1621_p5 }
  0x8d   : > { %808 = vmatpush2.bf16.msra.mxu1 %v1468_v50 }
  0x8e   : > { %809 = vmatprep.subr.bf16.mxu1 %v1472_v51  ;;  %p1624_p9 = pnand %p1623_p7, %p1617_p0 }
  0x8f   : > { %577 = vmatpush2.bf16.msra.mxu0 %v1394_v32  ;;  %v1504_v32 = vld [vmem:[#allocation8 + $0x90] ss:$8 sps:$4 sm:$0xff]  }
  0x90   : > { %578 = vmatprep.subr.bf16.mxu0 %v1395_v33  ;;  %v1505_v33 = vld [vmem:[#allocation8 + $0x84] ss:$8 sps:$4 sm:$0xff]  }
  0x91   : > { %810 = vmatpush2.bf16.msra.mxu1 %v1474_v54  ;;  %v1033_v54 = vld [vmem:[%s1942_s5] sm:$0x3] }
  0x92   : > { %811 = vmatprep.subr.bf16.mxu1 %v1478_v55 }
  0x93   : > { %579 = vmatpush2.bf16.msra.mxu0 %v1397_v36  ;;  %v380_v36 = vshrl.u32 %v379_v35, 7 }
  0x94   : > { %580 = vmatprep.subr.bf16.mxu0 %v1398_v37 }
  0x95   : > { %812 = vmatpush2.bf16.msra.mxu1 %v1480_v59  ;;  %v381_v37 = vsub.s32 0, %v380_v36  ;;  %v385_v39 = vsub.s32 1, %v380_v36 }
  0x96   : > { %813 = vmatprep.subr.bf16.mxu1 %v1484_v60 }
  0x97   : > { %581 = vmatpush2.bf16.msra.mxu0 %v1400_v40  ;;  %v382_v40 = vrot.slane %v377_v38, %v381_v37  ;;  %v1038_v55 = vrot.slane %v1033_v54, %v381_v37 }
  0x98   : > { %582 = vmatprep.subr.bf16.mxu0 %v1401_v41  ;;  %v386_v41 = vrot.slane %v377_v38, %v385_v39 }
  0x99   : > { %814 = vmatpush2.bf16.msra.mxu1 %v1486_v63 }
  0x9a   : > { %815 = vmatprep.subr.bf16.mxu1 %v1490_v0 }
  0x9b   : > { %583 = vmatpush2.bf16.msra.mxu0 %v1403_v44 }
  0x9c   : > { %584 = vmatprep.subr.bf16.mxu0 %v1404_v45 }
  0x9d   : > { %816 = vmatpush2.bf16.msra.mxu1 %v1492_v3 }
  0x9e   : > { %817 = vmatprep.subr.bf16.mxu1 %v1496_v4 }
  0x9f   : > { %585 = vmatpush2.bf16.msra.mxu0 %v1406_v48 }
  0xa0   : > { %586 = vmatprep.subr.bf16.mxu0 %v1407_v49 }
  0xa1   : > { %818 = vmatpush2.bf16.msra.mxu1 %v1498_v7 }
  0xa2   : > { %819 = vmatprep.subr.bf16.mxu1 %v1502_v31 }
  0xa3   : > { %587 = vmatpush2.bf16.msra.mxu0 %v1409_v52 }
  0xa4   : > { %992 = vmatprep.subr.bf16.mxu0 %v1414_v53 }
  0xa5   : > { %820 = vmatpush2.bf16.msra.mxu1 %v1504_v32 }
  0xa6   : > { %589 = vmatmul.mubr.bf16.vlgmr.msra.gmra.mxu0 %v1884_v56  ;;  %821 = vmatprep.subr.bf16.mxu1 %v1505_v33 }
  0xa7   : > { %993 = vmatpush1.bf16.msra.mxu0 %v1412_v57  ;;  %1024 = vmatprep.mubr.bf16.mxu0 %v1879_v14  ;;  %v1451_v14 = vld [vmem:[#allocation5] ss:$8 sps:$4 sm:$0xff]  }
  0xa8   : > { %994 = vmatprep.subr.bf16.mxu0 %v1417_v58  ;;  %v1042_v58 = vrot.slane %v1033_v54, %v385_v39 }
  0xa9   : > { %822 = vmatpush2.bf16.msra.mxu1 %v1507_v34 }
  0xab   : > { %995 = vmatpush1.bf16.msra.mxu0 %v1415_v61 }
  0xac   : > { %996 = vmatprep.subr.bf16.mxu0 %v1423_v62 }
  0xaf   : > { %997 = vmatpush1.bf16.msra.mxu0 %v1421_v1 }
  0xb0   : > { %998 = vmatprep.subr.bf16.mxu0 %v1429_v2 }
  0xb3   : > { %999 = vmatpush1.bf16.msra.mxu0 %v1427_v5 }
  0xb4   : > { %1000 = vmatprep.subr.bf16.mxu0 %v1435_v6 }
  0xb7   : > { %1001 = vmatpush1.bf16.msra.mxu0 %v1433_v8 }
  0xb8   : > { %1002 = vmatprep.subr.bf16.mxu0 %v1441_v9 }
  0xbb   : > { %1003 = vmatpush1.bf16.msra.mxu0 %v1439_v10 }
  0xbc   : > { %1004 = vmatprep.subr.bf16.mxu0 %v1447_v11 }
  0xbf   : > { %1005 = vmatpush1.bf16.msra.mxu0 %v1445_v12 }
  0xc0   : > { %1006 = vmatprep.subr.bf16.mxu0 %v1453_v13 }
  0xc3   : > { %1007 = vmatpush1.bf16.msra.mxu0 %v1451_v14 }
  0xc4   : > { %1008 = vmatprep.subr.bf16.mxu0 %v1459_v15 }
  0xc7   : > { %1009 = vmatpush2.bf16.msra.mxu0 %v1457_v16 }
  0xc8   : > { %1010 = vmatprep.subr.bf16.mxu0 %v1465_v17 }
  0xcb   : > { %1011 = vmatpush2.bf16.msra.mxu0 %v1463_v18 }
  0xcc   : > { %1012 = vmatprep.subr.bf16.mxu0 %v1471_v19 }
  0xcf   : > { %1013 = vmatpush2.bf16.msra.mxu0 %v1469_v20 }
  0xd0   : > { %1014 = vmatprep.subr.bf16.mxu0 %v1477_v21 }
  0xd3   : > { %1015 = vmatpush2.bf16.msra.mxu0 %v1475_v22 }
  0xd4   : > { %1016 = vmatprep.subr.bf16.mxu0 %v1483_v23 }
  0xd7   : > { %1017 = vmatpush2.bf16.msra.mxu0 %v1481_v24 }
  0xd8   : > { %1018 = vmatprep.subr.bf16.mxu0 %v1489_v25 }
  0xdb   : > { %1019 = vmatpush2.bf16.msra.mxu0 %v1487_v26 }
  0xdc   : > { %1020 = vmatprep.subr.bf16.mxu0 %v1495_v27 }
  0xdf   : > { %1021 = vmatpush2.bf16.msra.mxu0 %v1493_v28 }
  0xe0   : > { %1022 = vmatprep.subr.bf16.mxu0 %v1501_v29 }
  0xe3   : > { %1023 = vmatpush2.bf16.msra.mxu0 %v1499_v30 }
  0xe6   : > { %1025 = vmatmul.mubr.bf16.vlgmr.msra.gmra.mxu0 %v1884_v56 }
 0x166   : > { %v590_v42 = vpop.f32.mrf.mxu0 }
 0x167   : > { %v591_v43 = vadd.f32 %v590_v42, %v382_v40 }
 0x168   : > { %v592_v44 = vpop.f32.mrf.mxu0 }
 0x169   : > { %v593_v45 = vadd.f32 %v592_v44, %v386_v41  ;;  %v597_v48 = vpack.c.bf16 %v591_v43, %v591_v43 }
 0x16a   : > { %v594_v46 = vpop.f32.mrf.mxu0 }
 0x16b   : > { %v598_v47 = vpack.c.bf16 %v593_v45, %v593_v45 }
 0x16c   : > { %v595_v49 = vpop.f32.mrf.mxu0 }
 0x16d   : > { %823 = vmatprep.mubr.bf16.mxu1 %v598_v47 }
 0x16e   : > { %824 = vmatmul.mubr.bf16.vlgmr.msra.gmra.mxu1 %v597_v48 }
 0x1a6   : > { %v1026_v50 = vpop.f32.mrf.mxu0 }
 0x1a8   : > { %v1028_v51 = vpop.f32.mrf.mxu0 }
 0x1aa   : > { %v1030_v52 = vpop.f32.mrf.mxu0 }
 0x1ac   : > { %v1031_v53 = vpop.f32.mrf.mxu0 }
 0x22e   : > { %v825_v56 = vpop.f32.mrf.mxu1 }
 0x22f   : > { %v1027_v57 = vadd.f32 %v1026_v50, %v825_v56 }
 0x230   : > { %v827_v59 = vpop.f32.mrf.mxu1 }
 0x231   : > { %v1045_v60 = vadd.f32 %v1038_v55, %v1027_v57  ;;  %v1029_v61 = vadd.f32 %v1028_v51, %v827_v59 }
 0x232   : > { %v829_v62 = vpop.f32.mrf.mxu1 }
 0x233   : > { %1047 = vst [vmem:[%s311_s30] sm:$0xff] %v1045_v60  ;;  %v1046_v63 = vadd.f32 %v1042_v58, %v1029_v61 }
 0x234   : > { %v830_v0 = vpop.f32.mrf.mxu1 }
 0x235   : > { %1048 = vst [vmem:[%s311_s30 + $0x8] sm:$0xff] %v1046_v63 }
 0x236   : > { %1627 = shalt.err (!%p1624_p9)
}
 0x237   : > { %s1628_s1 = scalar_lea.hbm %s1900_s16, 256  ;;  %s1632_s29 = scalar_lea.hbm %s1943_s6, 512 }
 0x238   : > { %p1629_p13 = scmp.ne.s32.totalorder %s1900_s16, %s1628_s1  ;;  %p1633_p10 = scmp.lt.s32.totalorder %s1900_s16, %s1943_s6 }
 0x239   : > { %p1634_p11 = scmp.lt.s32.totalorder %s1632_s29, %s1628_s1 }
 0x23a   : > { %p1630_p1 = pnand %p1629_p13, %p1963_p6 }
 0x23b   : > { %p1635_p2 = por %p1634_p11, %p1633_p10 }
 0x23c   : > { %p1631_p8 = pneg %p1630_p1 }
 0x23e   : > { %p1636_p4 = pnand %p1635_p2, %p1631_p8 }
 0x240   : > { %1639 = shalt.err (!%p1636_p4)
}
 0x241   : > { %1297 = dma.vmem_to_hbm [thread:$0]  (%p1963_p6), %s1065_s14, 256, %s1900_s16, %s1050_s19  }
 0x242 PF: > { %s1076_s26 = sand.u32 1, %s1674_s21   ;;  %p1964_p12 = scmp.ne.s32.totalorder %s1950_s28, 0 }
 0x243   : > { %p1965_p0 = scmp.ge.s32.totalorder %s1686_s24, 2  ;;  %s1077_s30 = scalar_lea.sflag [#allocation4], %s1076_s26 }
 0x245   : > { %p1314_p5 = pnand %p1965_p0, %p1964_p12 }
 0x247   : > { %p1315_p3 = pneg %p1314_p5 }
 0x249   : > { %1669 = dma.done.wait (%p1315_p3), %s1077_s30, 256  }
 0x24a   : > { %1671 = vsyncadd (%p1315_p3), %s1077_s30, 4294967040  ;;  %p21_p7 = scmp.ge.s32.totalorder %s1810_s9, 4   ;;  %s1966_s21 = smov %s1678_s22 }
 0x24b   : > { %s1967_s22 = smov %s1682_s23  ;;  %s1968_s23 = smov %s1820_s11 }
 0x24c   : > { %s1969_s24 = smov %s1810_s9  ;;  %23 = sbr.rel (!%p21_p7) target bundleno = 9 (0x9), region = 101 }
 0x251   :  { %1082 = vsyncpa [#allocation3], 1 }
 0x252   :  { %1084 = vsyncpa [#allocation3 + $0x1], 1 }
 0x253   :  { %1085 = vsyncpa [#allocation6], 1 }
 0x254   :  { %1086 = vsyncpa [#allocation9], 1 }
 0x255   :  { %1087 = vsyncpa [#allocation4], 1 }
 0x256   :  { %1089 = vsyncpa [#allocation4 + $0x1], 1 }

</bundles_post_ra>
